<compile_context>
chip_gen: v5e
topology: v5e:2x2
jax: 0.10.0
libtpu: 0.0.40
codegen_flags: <defaults>
</compile_context>

<pallas_src>
import jax
import jax.numpy as jnp
from jax.experimental import pallas as pl
from jax.experimental.pallas import tpu as pltpu


# ----------------------------- kernel body ----------------------------------

def gnn_kernel(x_ref, adj_ref, w1_ref, u1_ref, w2_ref, u2_ref, out_ref):
    x = x_ref[...]                                   # [N, D_in]
    mask = (adj_ref[...] != 0).astype(jnp.float32)   # [N, N], reused by both layers

    hp = u1_ref.shape[0]                             # padded hidden width (128-mult)
    dp = u2_ref.shape[0]                             # padded output width (128-mult)

    # ---- layer 1 ----
    # One wide matmul produces [msg | self] in a single MXU pass.
    t1 = jnp.dot(x, w1_ref[...], preferred_element_type=jnp.float32)      # [N, 2*hp]
    msg1, self1 = t1[:, :hp], t1[:, hp:]             # 128-aligned register slices
    agg1 = jnp.dot(mask, msg1, preferred_element_type=jnp.float32)        # [N, hp]
    h = jnp.maximum(
        self1 + jnp.dot(agg1, u1_ref[...], preferred_element_type=jnp.float32),
        0.0)                                                              # [N, hp]

    # ---- layer 2 ----
    t2 = jnp.dot(h, w2_ref[...], preferred_element_type=jnp.float32)      # [N, 2*dp]
    msg2, self2 = t2[:, :dp], t2[:, dp:]
    agg2 = jnp.dot(mask, msg2, preferred_element_type=jnp.float32)        # [N, dp]
    out_ref[...] = jnp.maximum(
        self2 + jnp.dot(agg2, u2_ref[...], preferred_element_type=jnp.float32),
        0.0)                                                              # [N, dp]


# ----------------------------- wrapper ---------------------------------------

def _round_up(x, m):
    return ((x + m - 1) // m) * m


def _pad2d(a, rows, cols):
    r, c = a.shape
    return jnp.pad(a, ((0, rows - r), (0, cols - c)))


def _pack_params(params):
    """Split, zero-pad to 128-lane widths, and lane-concat the weights.

    Returns (W1 [D_in, 2*Hp], U1 [Hp, Hp], W2 [Hp, 2*Dp], U2 [Dp, Dp]).
    Zero padding is exact: padded hidden/output channels stay identically 0
    through relu, and padded reduction rows contribute 0 to every dot product.
    """
    wm1, wu1, wm2, wu2 = params
    d_in, h = wm1.shape
    d_out = wm2.shape[1]
    hp = _round_up(h, 128)
    dp = _round_up(d_out, 128)

    # layer 1: message weight + self-half of update weight, lane-concatenated
    w1 = jnp.concatenate(
        [_pad2d(wm1, d_in, hp), _pad2d(wu1[:d_in], d_in, hp)], axis=1)   # [D_in, 2*Hp]
    u1 = _pad2d(wu1[d_in:], hp, hp)                                      # [Hp, Hp]

    # layer 2
    w2 = jnp.concatenate(
        [_pad2d(wm2, hp, dp), _pad2d(wu2[:h], hp, dp)], axis=1)          # [Hp, 2*Dp]
    u2 = _pad2d(wu2[h:], dp, dp)                                         # [Dp, Dp]
    return w1, u1, w2, u2, d_out, dp


def gnn_forward(node_features, adj_matrix, params):
    n = node_features.shape[0]
    w1, u1, w2, u2, d_out, dp = _pack_params(params)

    vmem = pl.BlockSpec(memory_space=pltpu.MemorySpace.VMEM)

    out_padded = pl.pallas_call(
        gnn_kernel,
        out_shape=jax.ShapeDtypeStruct((n, dp), jnp.float32),
        in_specs=[vmem] * 6,
        out_specs=vmem,
    )(node_features, adj_matrix, w1, u1, w2, u2)

    # Trace-time slice back to the logical output width.
    return out_padded[:, :d_out]


# ----------------------------- reference -------------------------------------

def gnn_reference(node_features, adj_matrix, params):
    """Pure-JAX reference of the exact PyTorch semantics (for validation)."""
    wm1, wu1, wm2, wu2 = params
    mask = (adj_matrix != 0).astype(jnp.float32)

    def layer(x, wm, wu):
        d = x.shape[1]
        agg = mask @ (x @ wm)
        return jax.nn.relu(x @ wu[:d] + agg @ wu[d:])

    h = layer(node_features, wm1, wu1)
    return layer(h, wm2, wu2)


# ----------------------------- test -------------------------------------------

if __name__ == "__main__":
    # Small, deterministic problem: 8 nodes, input_dim=16, hidden=32, output=16
    N, D_IN, D_HID, D_OUT = 8, 16, 32, 16

    key = jax.random.PRNGKey(0)
    k_x, k_adj, k1, k2, k3, k4 = jax.random.split(key, 6)

    node_features = jax.random.normal(k_x, (N, D_IN), dtype=jnp.float32)
    # random 0/1 adjacency (may include zero-neighbor rows -> zero aggregation)
    adj_matrix = (jax.random.uniform(k_adj, (N, N)) > 0.5).astype(jnp.float32)

    params = (
        jax.random.normal(k1, (D_IN, D_HID), dtype=jnp.float32),           # layer1.message_weight
        jax.random.normal(k2, (D_IN + D_HID, D_HID), dtype=jnp.float32),   # layer1.update_weight
        jax.random.normal(k3, (D_HID, D_OUT), dtype=jnp.float32),          # layer2.message_weight
        jax.random.normal(k4, (D_HID + D_OUT, D_OUT), dtype=jnp.float32),  # layer2.update_weight
    )

    out = gnn_forward(node_features, adj_matrix, params)
    out = jax.block_until_ready(out)

    ref = gnn_reference(node_features, adj_matrix, params)
    assert out.shape == (N, D_OUT)
    assert jnp.allclose(out, ref, atol=1e-4, rtol=1e-4)

    print("KERNEL_OK")
</pallas_src>

<mosaic_0001>
module attributes {stable_mosaic.version = 11 : i64} {
  func.func @gnn_kernel(%arg0: memref<8x16xf32, #tpu.memory_space<vmem>>, %arg1: memref<8x8xf32, #tpu.memory_space<vmem>>, %arg2: memref<16x256xf32, #tpu.memory_space<vmem>>, %arg3: memref<128x128xf32, #tpu.memory_space<vmem>>, %arg4: memref<128x256xf32, #tpu.memory_space<vmem>>, %arg5: memref<128x128xf32, #tpu.memory_space<vmem>>, %arg6: memref<8x128xf32, #tpu.memory_space<vmem>>) attributes {dimension_semantics = [], scalar_prefetch = 0 : i64, scratch_operands = 0 : i64, tpu.core_type = #tpu.core_type<tc>} {
    %c0 = arith.constant 0 : index
    %c0_0 = arith.constant 0 : index
    %0 = vector.load %arg0[%c0, %c0_0] : memref<8x16xf32, #tpu.memory_space<vmem>>, vector<8x16xf32>
    %c0_1 = arith.constant 0 : index
    %c0_2 = arith.constant 0 : index
    %1 = vector.load %arg1[%c0_1, %c0_2] : memref<8x8xf32, #tpu.memory_space<vmem>>, vector<8x8xf32>
    %cst = arith.constant 0.000000e+00 : f32
    %2 = vector.broadcast %cst : f32 to vector<8x8xf32>
    %3 = arith.cmpf one, %1, %2 : vector<8x8xf32>
    %4 = arith.extui %3 : vector<8x8xi1> to vector<8x8xi32>
    %5 = arith.sitofp %4 : vector<8x8xi32> to vector<8x8xf32>
    %c0_3 = arith.constant 0 : index
    %c0_4 = arith.constant 0 : index
    %6 = vector.load %arg2[%c0_3, %c0_4] : memref<16x256xf32, #tpu.memory_space<vmem>>, vector<16x256xf32>
    %cst_5 = arith.constant dense<0.000000e+00> : vector<8x256xf32>
    %7 = tpu.matmul %0, %6, %cst_5 {dimension_numbers = #tpu.dot_dimension_numbers<[1], [0], [0], [1], [0, 0, 1, 1], [], []>} : vector<8x16xf32>, vector<16x256xf32>, vector<8x256xf32> -> vector<8x256xf32>
    %8 = vector.extract_strided_slice %7 {offsets = [0, 0], sizes = [8, 128], strides = [1, 1]} : vector<8x256xf32> to vector<8x128xf32>
    %9 = vector.extract_strided_slice %7 {offsets = [0, 128], sizes = [8, 128], strides = [1, 1]} : vector<8x256xf32> to vector<8x128xf32>
    %cst_6 = arith.constant dense<0.000000e+00> : vector<8x128xf32>
    %10 = tpu.matmul %5, %8, %cst_6 {dimension_numbers = #tpu.dot_dimension_numbers<[1], [0], [0], [1], [0, 0, 1, 1], [], []>} : vector<8x8xf32>, vector<8x128xf32>, vector<8x128xf32> -> vector<8x128xf32>
    %c0_7 = arith.constant 0 : index
    %c0_8 = arith.constant 0 : index
    %11 = vector.load %arg3[%c0_7, %c0_8] : memref<128x128xf32, #tpu.memory_space<vmem>>, vector<128x128xf32>
    %cst_9 = arith.constant dense<0.000000e+00> : vector<8x128xf32>
    %12 = tpu.matmul %10, %11, %cst_9 {dimension_numbers = #tpu.dot_dimension_numbers<[1], [0], [0], [1], [0, 0, 1, 1], [], []>} : vector<8x128xf32>, vector<128x128xf32>, vector<8x128xf32> -> vector<8x128xf32>
    %13 = arith.addf %9, %12 : vector<8x128xf32>
    %cst_10 = arith.constant 0.000000e+00 : f32
    %14 = vector.broadcast %cst_10 : f32 to vector<8x128xf32>
    %15 = arith.maximumf %13, %14 : vector<8x128xf32>
    %c0_11 = arith.constant 0 : index
    %c0_12 = arith.constant 0 : index
    %16 = vector.load %arg4[%c0_11, %c0_12] : memref<128x256xf32, #tpu.memory_space<vmem>>, vector<128x256xf32>
    %cst_13 = arith.constant dense<0.000000e+00> : vector<8x256xf32>
    %17 = tpu.matmul %15, %16, %cst_13 {dimension_numbers = #tpu.dot_dimension_numbers<[1], [0], [0], [1], [0, 0, 1, 1], [], []>} : vector<8x128xf32>, vector<128x256xf32>, vector<8x256xf32> -> vector<8x256xf32>
    %18 = vector.extract_strided_slice %17 {offsets = [0, 0], sizes = [8, 128], strides = [1, 1]} : vector<8x256xf32> to vector<8x128xf32>
    %19 = vector.extract_strided_slice %17 {offsets = [0, 128], sizes = [8, 128], strides = [1, 1]} : vector<8x256xf32> to vector<8x128xf32>
    %cst_14 = arith.constant dense<0.000000e+00> : vector<8x128xf32>
    %20 = tpu.matmul %5, %18, %cst_14 {dimension_numbers = #tpu.dot_dimension_numbers<[1], [0], [0], [1], [0, 0, 1, 1], [], []>} : vector<8x8xf32>, vector<8x128xf32>, vector<8x128xf32> -> vector<8x128xf32>
    %c0_15 = arith.constant 0 : index
    %c0_16 = arith.constant 0 : index
    %21 = vector.load %arg5[%c0_15, %c0_16] : memref<128x128xf32, #tpu.memory_space<vmem>>, vector<128x128xf32>
    %cst_17 = arith.constant dense<0.000000e+00> : vector<8x128xf32>
    %22 = tpu.matmul %20, %21, %cst_17 {dimension_numbers = #tpu.dot_dimension_numbers<[1], [0], [0], [1], [0, 0, 1, 1], [], []>} : vector<8x128xf32>, vector<128x128xf32>, vector<8x128xf32> -> vector<8x128xf32>
    %23 = arith.addf %19, %22 : vector<8x128xf32>
    %cst_18 = arith.constant 0.000000e+00 : f32
    %24 = vector.broadcast %cst_18 : f32 to vector<8x128xf32>
    %25 = arith.maximumf %23, %24 : vector<8x128xf32>
    %c0_19 = arith.constant 0 : index
    %c0_20 = arith.constant 0 : index
    %26 = vector.load %arg6[%c0_19, %c0_20] : memref<8x128xf32, #tpu.memory_space<vmem>>, vector<8x128xf32>
    tpu.vector_store %arg6[%c0_19, %c0_20], %25 {strides = array<i32>} : memref<8x128xf32, #tpu.memory_space<vmem>>, vector<8x128xf32>,
    return
  }
}

</mosaic_0001>

<bundles_post_ra>
// kernel: tpu_custom_call.1
= control target key start
LH: loop header
LB: loop body
LE: loop exit
PB: predicated region body
PF: predicated region fallthrough
CT: control target
= control target key end

     0   :  { %11 = vsyncpa [#allocation3], 0  ;;  %s655_s0 = inlined_call_operand.hbm [shape: f32[8,16], index: 0, kind: input, shape index: {}]   ;;  %s656_s1 = inlined_call_operand.hbm [shape: f32[8,8], index: 1, kind: input, shape index: {}]   ;;  %s657_s2 = inlined_call_operand.hbm [shape: f32[16,256], index: 2, kind: input, shape index: {}]   ;;  %s658_s3 = inlined_call_operand.hbm [shape: f32[128,128], index: 3, kind: input, shape index: {}]   ;;  %s659_s4 = inlined_call_operand.hbm [shape: f32[128,256], index: 4, kind: input, shape index: {}]   ;;  %s660_s5 = inlined_call_operand.hbm [shape: f32[128,128], index: 5, kind: input, shape index: {}]   ;;  %s661_s6 = inlined_call_operand.hbm [shape: f32[8,128], index: 6, kind: output, shape index: {}]  }
   0x1   :  { %12 = vsyncpa [#allocation6], 0 }
   0x2   :  { %13 = vsyncpa [#allocation9], 0 }
   0x3   :  { %14 = vsyncpa [#allocation12], 0  ;;  %s32_s23 = sshll.u32 %s656_s1, 4  ;;  %s33_s23 = int_to_ptr.hbm [resolvable:$true] %s32_s23 }
   0x4   :  { %15 = vsyncpa [#allocation4], 0  ;;  %s575_s24 = smov [#allocation5]   ;;  %s55_s28 = sshll.u32 %s658_s3, 4  ;;  %s56_s28 = int_to_ptr.hbm [resolvable:$true] %s55_s28 }
   0x5   :  { %s34_s25 = sshll.u32 %s575_s24, 4  ;;  %s576_s29 = smov [#allocation8]   ;;  %s35_s25 = int_to_ptr.vmem [resolvable:$true] %s34_s25 }
   0x6   :  { %37 = dma.hbm_to_vmem [thread:$0]  %s33_s23, 128, %s35_s25, [#allocation6]  }
   0x7   :  { %s57_s30 = sshll.u32 %s576_s29, 4  ;;  %s577_s7 = smov 128   ;;  %s58_s30 = int_to_ptr.vmem [resolvable:$true] %s57_s30 }
   0x8   :  { %s578_s8 = smov 8   ;;  %s21_s10 = sshll.u32 %s655_s0, 4  ;;  %s22_s10 = int_to_ptr.hbm [resolvable:$true] %s21_s10 }
   0x9   :  { %63 = dma.hbm_to_vmem [thread:$0]  %s56_s28, 2048, %s58_s30, [#allocation9], %s577_s7, %s577_s7, %s578_s8  }
   0xa   :  { %s579_s11 = smov [#allocation2]   ;;  %s42_s14 = sshll.u32 %s657_s2, 4  ;;  %s43_s14 = int_to_ptr.hbm [resolvable:$true] %s42_s14 }
   0xb   :  { %s23_s12 = sshll.u32 %s579_s11, 4  ;;  %s580_s15 = smov [#allocation7]   ;;  %s24_s12 = int_to_ptr.vmem [resolvable:$true] %s23_s12 }
   0xc   :  { %26 = dma.hbm_to_vmem [thread:$0]  %s22_s10, 128, %s24_s12, [#allocation3]  }
   0xd   :  { %s44_s16 = sshll.u32 %s580_s15, 4  ;;  %s581_s17 = smov 256   ;;  %s45_s16 = int_to_ptr.vmem [resolvable:$true] %s44_s16 }
   0xe   :  { %s582_s18 = smov 16   ;;  %s68_s0 = sshll.u32 %s659_s4, 4  ;;  %s69_s0 = int_to_ptr.hbm [resolvable:$true] %s68_s0 }
   0xf   :  { %50 = dma.hbm_to_vmem [thread:$0]  %s43_s14, 512, %s45_s16, [#allocation6], %s581_s17, %s581_s17, %s582_s18  }
  0x10   :  { %s583_s21 = smov [#allocation10]   ;;  %s81_s2 = sshll.u32 %s660_s5, 4  ;;  %s82_s2 = int_to_ptr.hbm [resolvable:$true] %s81_s2 }
  0x11   :  { %s70_s22 = sshll.u32 %s583_s21, 4  ;;  %s584_s25 = smov [#allocation11]   ;;  %s71_s22 = int_to_ptr.vmem [resolvable:$true] %s70_s22 }
  0x12   :  { %76 = dma.hbm_to_vmem [thread:$0]  %s69_s0, 4096, %s71_s22, [#allocation9], %s581_s17, %s581_s17, %s582_s18  }
  0x13   :  { %s83_s26 = sshll.u32 %s584_s25, 4  ;;  %s84_s26 = int_to_ptr.vmem [resolvable:$true] %s83_s26 }
  0x14   :  { %89 = dma.hbm_to_vmem [thread:$0]  %s82_s2, 2048, %s84_s26, [#allocation12], %s577_s7, %s577_s7, %s578_s8  }
  0x15   :  { %565 = dma.done.wait [#allocation3], 128  }
  0x16   :  { %566 = vsyncadd [#allocation3], 4294967168 }
  0x17   :  { %567 = dma.done.wait [#allocation6], 640  }
  0x18   :  { %568 = vsyncadd [#allocation6], 4294966656 }
  0x19   :  { %569 = dma.done.wait [#allocation9], 6144  }
  0x1a   :  { %570 = vsyncadd [#allocation9], 4294961152 }
  0x1b   :  { %571 = dma.done.wait [#allocation12], 2048  }
  0x1c   :  { %572 = vsyncadd [#allocation12], 4294965248  ;;  %v121_v0 = vld [vmem:[#allocation7 + $0x10] sm:$0xff]  ;;  %v119_v1 = vld [vmem:[#allocation7] sm:$0xff]  ;;  %vm123_vm0 = vcmask 130048   ;;  %v585_v20 = vmov 0.0  }
  0x1d   :  { %141 = vmatpush.msra.mxu0 %v121_v0  ;;  %v114_v2 = vld [vmem:[#allocation2] sm:$0xff]  ;;  %v122_v3 = vld [vmem:[#allocation7 + $0x18] sm:$0xff]  ;;  %v120_v4 = vld [vmem:[#allocation7 + $0x8] sm:$0xff]  ;;  %vm167_vm2 = vcmask 64512   ;;  %s586_s4 = smov [#allocation13]   ;;  %s367_s29 = sshll.u32 %s661_s6, 4  ;;  %s368_s29 = int_to_ptr.hbm [resolvable:$true] %s367_s29 }
  0x1e   :  { %161 = vmatpush.msra.mxu3 %v122_v3  ;;  %v206_v5 = vld [vmem:[#allocation8 + $0x78] sm:$0xff]  ;;  %v205_v6 = vld [vmem:[#allocation8 + $0x70] sm:$0xff]  ;;  %v204_v7 = vld [vmem:[#allocation8 + $0x68] sm:$0xff]  ;;  %s365_s5 = sshll.u32 %s586_s4, 4  ;;  %s366_s5 = int_to_ptr.vmem [resolvable:$true] %s365_s5 }
  0x1f   :  { %142 = vmatpush.msra.mxu0 %v119_v1  ;;  %v203_v8 = vld [vmem:[#allocation8 + $0x60] sm:$0xff]  ;;  %v202_v9 = vld [vmem:[#allocation8 + $0x58] sm:$0xff]  ;;  %v201_v10 = vld [vmem:[#allocation8 + $0x50] sm:$0xff] }
  0x20   :  { %381 = vmatmul.msk.f32.vlgmr.msra.gmra.mxu0 %vm123_vm0, %v114_v2  ;;  %162 = vmatpush.msra.mxu3 %v120_v4  ;;  %v200_v11 = vld [vmem:[#allocation8 + $0x48] sm:$0xff]  ;;  %v199_v12 = vld [vmem:[#allocation8 + $0x40] sm:$0xff]  ;;  %v198_v13 = vld [vmem:[#allocation8 + $0x38] sm:$0xff] }
  0x21   :  { %382 = vmatmul.msk.f32.vlgmr.msra.gmra.mxu3 %vm123_vm0, %v114_v2  ;;  %v197_v14 = vld [vmem:[#allocation8 + $0x30] sm:$0xff]  ;;  %v196_v15 = vld [vmem:[#allocation8 + $0x28] sm:$0xff]  ;;  %v115_v16 = vld [vmem:[#allocation5] sm:$0xff] }
  0x22   :  { %207 = vmatpush.msrb.mxu3 %v206_v5  ;;  %v195_v17 = vld [vmem:[#allocation8 + $0x20] sm:$0xff]  ;;  %v194_v18 = vld [vmem:[#allocation8 + $0x18] sm:$0xff]  ;;  %vm116_vm1 = vcmp.ne.f32.partialorder %v115_v16, 0.0  ;;  %v193_v19 = vld [vmem:[#allocation8 + $0x10] sm:$0xff] }
  0x23   :  { %v646_v21 = vsel %vm116_vm1, 1.0, %v585_v20  ;;  %v192_v22 = vld [vmem:[#allocation8 + $0x8] sm:$0xff]  ;;  %v191_v24 = vld [vmem:[#allocation8] sm:$0xff]  ;;  %v259_v25 = vld [vmem:[#allocation10 + $0xf0] sm:$0xff] }
  0x24   :  { %208 = vmatpush.msrb.mxu3 %v205_v6  ;;  %v260_v26 = vld [vmem:[#allocation10 + $0xf8] sm:$0xff]  ;;  %v257_v27 = vld [vmem:[#allocation10 + $0xe0] sm:$0xff]  ;;  %v258_v28 = vld [vmem:[#allocation10 + $0xe8] sm:$0xff] }
  0x25   :  { %281 = vmatpush.msrb.mxu0 %v260_v26  ;;  %v255_v29 = vld [vmem:[#allocation10 + $0xd0] sm:$0xff]  ;;  %v256_v30 = vld [vmem:[#allocation10 + $0xd8] sm:$0xff]  ;;  %v253_v31 = vld [vmem:[#allocation10 + $0xc0] sm:$0xff] }
  0x26   :  { %209 = vmatpush.msrb.mxu3 %v204_v7  ;;  %v254_v32 = vld [vmem:[#allocation10 + $0xc8] sm:$0xff]  ;;  %v251_v33 = vld [vmem:[#allocation10 + $0xb0] sm:$0xff]  ;;  %v252_v34 = vld [vmem:[#allocation10 + $0xb8] sm:$0xff] }
  0x27   :  { %282 = vmatpush.msrb.mxu0 %v258_v28  ;;  %v249_v35 = vld [vmem:[#allocation10 + $0xa0] sm:$0xff]  ;;  %v250_v36 = vld [vmem:[#allocation10 + $0xa8] sm:$0xff]  ;;  %v247_v37 = vld [vmem:[#allocation10 + $0x90] sm:$0xff] }
  0x28   :  { %210 = vmatpush.msrb.mxu3 %v203_v8  ;;  %v248_v38 = vld [vmem:[#allocation10 + $0x98] sm:$0xff]  ;;  %v245_v39 = vld [vmem:[#allocation10 + $0x80] sm:$0xff]  ;;  %v246_v40 = vld [vmem:[#allocation10 + $0x88] sm:$0xff] }
  0x29   :  { %283 = vmatpush.msrb.mxu0 %v256_v30  ;;  %v243_v41 = vld [vmem:[#allocation10 + $0x70] sm:$0xff]  ;;  %v244_v42 = vld [vmem:[#allocation10 + $0x78] sm:$0xff]  ;;  %v241_v43 = vld [vmem:[#allocation10 + $0x60] sm:$0xff] }
  0x2a   :  { %211 = vmatpush.msrb.mxu3 %v202_v9  ;;  %v242_v44 = vld [vmem:[#allocation10 + $0x68] sm:$0xff]  ;;  %v239_v45 = vld [vmem:[#allocation10 + $0x50] sm:$0xff]  ;;  %v240_v46 = vld [vmem:[#allocation10 + $0x58] sm:$0xff] }
  0x2b   :  { %284 = vmatpush.msrb.mxu0 %v254_v32  ;;  %v237_v47 = vld [vmem:[#allocation10 + $0x40] sm:$0xff]  ;;  %v238_v48 = vld [vmem:[#allocation10 + $0x48] sm:$0xff]  ;;  %v235_v49 = vld [vmem:[#allocation10 + $0x30] sm:$0xff] }
  0x2c   :  { %212 = vmatpush.msrb.mxu3 %v201_v10  ;;  %v236_v50 = vld [vmem:[#allocation10 + $0x38] sm:$0xff]  ;;  %v233_v52 = vld [vmem:[#allocation10 + $0x20] sm:$0xff]  ;;  %v234_v53 = vld [vmem:[#allocation10 + $0x28] sm:$0xff] }
  0x2d   :  { %285 = vmatpush.msrb.mxu0 %v252_v34  ;;  %v231_v54 = vld [vmem:[#allocation10 + $0x10] sm:$0xff]  ;;  %v232_v55 = vld [vmem:[#allocation10 + $0x18] sm:$0xff]  ;;  %v229_v56 = vld [vmem:[#allocation10] sm:$0xff] }
  0x2e   :  { %213 = vmatpush.msrb.mxu3 %v200_v11  ;;  %v230_v57 = vld [vmem:[#allocation10 + $0x8] sm:$0xff]  ;;  %v336_v63 = vld [vmem:[#allocation11 + $0x78] sm:$0xff]  ;;  %v335_v0 = vld [vmem:[#allocation11 + $0x70] sm:$0xff] }
  0x2f   :  { %286 = vmatpush.msrb.mxu0 %v250_v36  ;;  %v334_v1 = vld [vmem:[#allocation11 + $0x68] sm:$0xff]  ;;  %v333_v2 = vld [vmem:[#allocation11 + $0x60] sm:$0xff]  ;;  %v332_v3 = vld [vmem:[#allocation11 + $0x58] sm:$0xff] }
  0x30   :  { %214 = vmatpush.msrb.mxu3 %v199_v12  ;;  %v331_v4 = vld [vmem:[#allocation11 + $0x50] sm:$0xff]  ;;  %v330_v5 = vld [vmem:[#allocation11 + $0x48] sm:$0xff]  ;;  %v329_v6 = vld [vmem:[#allocation11 + $0x40] sm:$0xff] }
  0x31   :  { %287 = vmatpush.msrb.mxu0 %v248_v38  ;;  %v328_v7 = vld [vmem:[#allocation11 + $0x38] sm:$0xff]  ;;  %v327_v8 = vld [vmem:[#allocation11 + $0x30] sm:$0xff]  ;;  %v326_v9 = vld [vmem:[#allocation11 + $0x28] sm:$0xff] }
  0x32   :  { %215 = vmatpush.msrb.mxu3 %v198_v13  ;;  %v325_v10 = vld [vmem:[#allocation11 + $0x20] sm:$0xff]  ;;  %v324_v11 = vld [vmem:[#allocation11 + $0x18] sm:$0xff]  ;;  %v323_v12 = vld [vmem:[#allocation11 + $0x10] sm:$0xff] }
  0x33   :  { %288 = vmatpush.msrb.mxu0 %v246_v40  ;;  %v322_v13 = vld [vmem:[#allocation11 + $0x8] sm:$0xff] }
  0x34   :  { %216 = vmatpush.msrb.mxu3 %v197_v14  ;;  %v321_v14 = vld [vmem:[#allocation11] sm:$0xff] }
  0x35   :  { %289 = vmatpush.msrb.mxu0 %v244_v42 }
  0x36   :  { %217 = vmatpush.msrb.mxu3 %v196_v15 }
  0x37   :  { %290 = vmatpush.msrb.mxu0 %v242_v44 }
  0x38   :  { %218 = vmatpush.msrb.mxu3 %v195_v17 }
  0x39   :  { %291 = vmatpush.msrb.mxu0 %v240_v46 }
  0x3a   :  { %219 = vmatpush.msrb.mxu3 %v194_v18 }
  0x3b   :  { %292 = vmatpush.msrb.mxu0 %v238_v48 }
  0x3c   :  { %220 = vmatpush.msrb.mxu3 %v193_v19 }
  0x3d   :  { %293 = vmatpush.msrb.mxu0 %v236_v50 }
  0x3e   :  { %221 = vmatpush.msrb.mxu3 %v192_v22 }
  0x3f   :  { %294 = vmatpush.msrb.mxu0 %v234_v53 }
  0x40   :  { %222 = vmatpush.msrb.mxu3 %v191_v24 }
  0x41   :  { %295 = vmatpush.msrb.mxu0 %v232_v55 }
  0x43   :  { %296 = vmatpush.msrb.mxu0 %v230_v57 }
  0x9d   :  { %v144_v23 = vpop.f32.mrf.mxu0 }
  0x9e   :  { %186 = vmatpush.msra.mxu2 %v144_v23 }
  0x9f   :  { %383 = vmatmul.msk.f32.vlgmr.msra.gmra.mxu2 %vm167_vm2, %v646_v21 }
  0xa0   :  { %261 = vmatpush.msrb.mxu2 %v259_v25 }
  0xa2   :  { %262 = vmatpush.msrb.mxu2 %v257_v27 }
  0xa4   :  { %263 = vmatpush.msrb.mxu2 %v255_v29  ;;  %v164_v58 = vpop.f32.mrf.mxu3 }
  0xa6   :  { %264 = vmatpush.msrb.mxu2 %v253_v31 }
  0xa8   :  { %265 = vmatpush.msrb.mxu2 %v251_v33 }
  0xaa   :  { %266 = vmatpush.msrb.mxu2 %v249_v35 }
  0xac   :  { %267 = vmatpush.msrb.mxu2 %v247_v37 }
  0xae   :  { %268 = vmatpush.msrb.mxu2 %v245_v39 }
  0xb0   :  { %269 = vmatpush.msrb.mxu2 %v243_v41 }
  0xb2   :  { %270 = vmatpush.msrb.mxu2 %v241_v43 }
  0xb4   :  { %271 = vmatpush.msrb.mxu2 %v239_v45 }
  0xb6   :  { %272 = vmatpush.msrb.mxu2 %v237_v47 }
  0xb8   :  { %273 = vmatpush.msrb.mxu2 %v235_v49 }
  0xba   :  { %274 = vmatpush.msrb.mxu2 %v233_v52 }
  0xbc   :  { %275 = vmatpush.msrb.mxu2 %v231_v54 }
  0xbe   :  { %276 = vmatpush.msrb.mxu2 %v229_v56 }
 0x122   :  { %v188_v51 = vpop.f32.mrf.mxu2 }
 0x123   :  { %223 = vmatmul.f32.vlgmr.msrb.gmra.mxu3 %v188_v51 }
 0x1a6   :  { %v224_v59 = vpop.f32.mrf.mxu3 }
 0x1a7   :  { %v227_v60 = vadd.f32 %v224_v59, %v164_v58 }
 0x1a9   :  { %v228_v61 = vmax.f32 %v227_v60, 0.0 }
 0x1ab   :  { %277 = vmatmul.f32.vlgmr.msrb.gmra.mxu2 %v228_v61  ;;  %297 = vmatmul.f32.vlgmr.msrb.gmra.mxu0 %v228_v61 }
 0x228   :  { %v298_v16 = vpop.f32.mrf.mxu0 }
 0x22e   :  { %v278_v62 = vpop.f32.mrf.mxu2 }
 0x22f   :  { %316 = vmatpush.msra.mxu1 %v278_v62 }
 0x230   :  { %384 = vmatmul.msk.f32.vlgmr.msra.gmra.mxu1 %vm167_vm2, %v646_v21 }
 0x231   :  { %337 = vmatpush.msrb.mxu1 %v336_v63 }
 0x233   :  { %338 = vmatpush.msrb.mxu1 %v335_v0 }
 0x235   :  { %339 = vmatpush.msrb.mxu1 %v334_v1 }
 0x237   :  { %340 = vmatpush.msrb.mxu1 %v333_v2 }
 0x239   :  { %341 = vmatpush.msrb.mxu1 %v332_v3 }
 0x23b   :  { %342 = vmatpush.msrb.mxu1 %v331_v4 }
 0x23d   :  { %343 = vmatpush.msrb.mxu1 %v330_v5 }
 0x23f   :  { %344 = vmatpush.msrb.mxu1 %v329_v6 }
 0x241   :  { %345 = vmatpush.msrb.mxu1 %v328_v7 }
 0x243   :  { %346 = vmatpush.msrb.mxu1 %v327_v8 }
 0x245   :  { %347 = vmatpush.msrb.mxu1 %v326_v9 }
 0x247   :  { %348 = vmatpush.msrb.mxu1 %v325_v10 }
 0x249   :  { %349 = vmatpush.msrb.mxu1 %v324_v11 }
 0x24b   :  { %350 = vmatpush.msrb.mxu1 %v323_v12 }
 0x24d   :  { %351 = vmatpush.msrb.mxu1 %v322_v13 }
 0x24f   :  { %352 = vmatpush.msrb.mxu1 %v321_v14 }
 0x2ad   :  { %v318_v15 = vpop.f32.mrf.mxu1 }
 0x2ae   :  { %353 = vmatmul.f32.vlgmr.msrb.gmra.mxu1 %v318_v15 }
 0x32b   :  { %v354_v17 = vpop.f32.mrf.mxu1 }
 0x32c   :  { %v357_v18 = vadd.f32 %v354_v17, %v298_v16 }
 0x32e   :  { %v358_v19 = vmax.f32 %v357_v18, 0.0 }
 0x330   :  { %359 = vst [vmem:[#allocation13] sm:$0xff] %v358_v19 }
 0x331   :  { %370 = dma.vmem_to_hbm [thread:$0]  %s366_s5, 128, %s368_s29, [#allocation4]  }
 0x332   :  { %573 = dma.done.wait [#allocation4], 128  }
 0x333   :  { %574 = vsyncadd [#allocation4], 4294967168 }
 0x334   :  { %375 = vsyncpa [#allocation3], 1 }
 0x335   :  { %376 = vsyncpa [#allocation6], 1 }
 0x336   :  { %377 = vsyncpa [#allocation9], 1 }
 0x337   :  { %378 = vsyncpa [#allocation12], 1 }
 0x338   :  { %379 = vsyncpa [#allocation4], 1 }

</bundles_post_ra>
